<compile_context>
chip_gen: v6e
topology: v6e:2x2x1
jax: 0.10.0
libtpu: 0.0.40
codegen_flags: <defaults>
</compile_context>

<pallas_src>
import functools
from typing import NamedTuple

import numpy as np

import jax
import jax.numpy as jnp
from jax.experimental import pallas as pl
from jax.experimental.pallas import tpu as pltpu


def _round_up(x: int, m: int) -> int:
    return (x + m - 1) // m * m


def _cdiv(a: int, b: int) -> int:
    return -(-a // b)


def _vmem_capacity_bytes() -> int:
    try:
        info = pltpu.get_tpu_info()
        for attr in ("vmem_capacity_bytes", "vmem_bytes"):
            cap = getattr(info, attr, None)
            if cap:
                return int(cap)
    except Exception:
        pass
    return 64 << 20  # conservative fallback (v7x-sized)


def _num_tensorcores() -> int:
    # v7x has 2 TensorCores per chip; v5e/v6e have 1.
    try:
        kind = (getattr(jax.devices()[0], "device_kind", "") or "").lower()
        if "v7" in kind:
            return 2
    except Exception:
        pass
    return 1


def _choose_block(layer_dims, weight_bytes: int) -> int:
    """Square weight-tile edge (multiple of 128): bigger tiles -> fewer ~0.35us
    grid steps, smaller tiles -> less per-layer zero padding.  Pick the
    candidate minimizing estimated weight HBM traffic + per-step overhead."""
    best_b, best_cost = 128, None
    for b in (128, 256, 384, 512):
        steps, byts = 0, 0
        for din, dout in layer_dims:
            kb, nb = _cdiv(din, b), _cdiv(dout, b)
            steps += kb * nb
            byts += kb * nb * b * b * weight_bytes
        cost = byts / 1.2e12 + steps * 0.35e-6
        if best_cost is None or cost < best_cost:
            best_b, best_cost = b, cost
    return best_b


class SAEConfig(NamedTuple):
    block: int          # weight tile edge (multiple of 128)
    num_layers: int
    num_steps: int      # total (layer, n_block, k_block) grid steps
    n_in_blocks: int    # blocks in the first layer's (padded) input width
    n_out_blocks: int   # blocks in the last layer's (padded) output width
    n_blk_max: int      # max blocks of any layer width (act slab depth)
    in_features: int
    out_features: int


def _sae_kernel(lay_ref, kb_ref, nb_ref, lastk_ref, bblk_ref, oblk_ref,
                x_ref, w_ref, b_ref, o_ref, act_ref, *, num_layers):
    # x_ref   : (tm, n_in_blocks*blk)  padded input batch tile (resident per m)
    # w_ref   : (1, blk, blk)          this step's weight tile (streamed, HBM-bound)
    # b_ref   : (1, 1, blk)            this step's bias tile (f32)
    # o_ref   : (1, tm, blk)           output n-block (written on the last layer)
    # act_ref : (2*n_blk_max, tm, blk) f32 ping-pong activation blocks (VMEM resident)
    s = pl.program_id(1)
    blk = w_ref.shape[1]
    n_in_blocks = x_ref.shape[1] // blk
    n_slab = act_ref.shape[0] // 2

    lay = lay_ref[s]
    kb = kb_ref[s]
    nb = nb_ref[s]
    is_first_k = kb == 0
    is_last_k = lastk_ref[s] == 1

    slot_in = lay % 2
    slot_out = 1 - slot_in
    in_idx = slot_in * n_slab + kb
    out_idx = slot_out * n_slab + nb

    # Stage the input batch tile into ping-pong slot 0 once per batch tile.
    @pl.when(s == 0)
    def _():
        for i in range(n_in_blocks):          # static unrolled, static lane slices
            act_ref[i] = x_ref[:, i * blk:(i + 1) * blk].astype(jnp.float32)

    a = act_ref[in_idx]                        # (tm, blk) f32, VMEM resident
    w = w_ref[0]                               # (blk, blk), streamed from HBM
    if a.dtype != w.dtype:
        a = a.astype(w.dtype)                  # bf16 weights -> bf16 MXU feed
    part = jnp.dot(a, w, preferred_element_type=jnp.float32)   # f32 accumulate

    not_last = jnp.logical_not(is_last_k)

    # Accumulate partials for all but the last K block of this (layer, n) tile.
    @pl.when(jnp.logical_and(not_last, is_first_k))
    def _():
        act_ref[out_idx] = part

    @pl.when(jnp.logical_and(not_last, jnp.logical_not(is_first_k)))
    def _():
        act_ref[out_idx] += part

    # Fused layer epilogue on the last K block: bias (+ sigmoid) applied to the
    # in-register partial.  In the common single-K-block case this removes a
    # tm*blk f32 store + reload per layer (vst slot is the tight one on v5e).
    @pl.when(is_last_k)
    def _():
        prior = act_ref[out_idx]               # stale when is_first_k; not selected
        y = jnp.where(is_first_k, part, prior + part) + b_ref[0]
        is_last_layer = lay == num_layers - 1

        @pl.when(jnp.logical_not(is_last_layer))
        def _():
            act_ref[out_idx] = jax.nn.sigmoid(y)

        @pl.when(is_last_layer)
        def _():
            o_ref[0] = y.astype(o_ref.dtype)   # lane-dense blocked output


def _choose_tm(batch, config, x_bytes, vmem_cap, num_tc):
    blk = config.block
    # Per batch-row VMEM of the resident state: 2-slot f32 act slab + the
    # double-buffered x tile.  Keep under ~45% of physical VMEM so the streamed
    # weight / bias / output double buffers and headroom fit (v7x: 64 MiB).
    per_row = 2 * config.n_blk_max * blk * 4 + 2 * config.n_in_blocks * blk * x_bytes
    cap_rows = max(8, (int(vmem_cap * 0.45) // per_row) // 8 * 8)
    tm = min(512, cap_rows, _round_up(batch, 8))
    if tm >= 256:
        tm = tm // 256 * 256      # full MXU passes on v6e/v7x (256-wide MXU)
    elif tm >= 128:
        tm = 128                  # full MXU passes on v5e (128-wide MXU)
    # v7x: 2 TensorCores -> make sure the "parallel" batch axis has >= 2 tiles.
    if num_tc > 1 and _round_up(batch, 8) > 8:
        while tm > 8 and _cdiv(batch, tm) < num_tc:
            tm = max(8, _round_up(tm // 2, 8))
    return tm


def sae_forward(x, buffers, config):
    """Fused SAE forward: x (B, in) -> (B, in); one pallas_call for all layers.

    buffers: ragged-packed weight/bias tiles + per-step int32 metadata (see
    pack_sae_params).  config: static packing description (hashable)."""
    batch, in_f = x.shape
    assert in_f == config.in_features
    blk = config.block
    x_bytes = jnp.dtype(x.dtype).itemsize
    w_bytes = jnp.dtype(buffers["w_blocks"].dtype).itemsize

    vmem_cap = _vmem_capacity_bytes()
    num_tc = _num_tensorcores()
    tm = _choose_tm(batch, config, x_bytes, vmem_cap, num_tc)
    b_pad = _round_up(batch, tm)
    din0_pad = config.n_in_blocks * blk

    # Lane-dense input slab, narrowed to the FIRST layer's padded width (not the
    # global max width).  Zero padding is exact: padded lanes hit zero weight rows.
    x_pad = jnp.zeros((b_pad, din0_pad), x.dtype).at[:batch, :in_f].set(x)

    grid = (b_pad // tm, config.num_steps)

    vmem_est = (2 * config.n_blk_max * tm * blk * 4   # resident f32 act slab
                + 2 * tm * din0_pad * x_bytes          # x double buffer
                + 2 * blk * blk * w_bytes              # weight double buffer
                + 2 * blk * 4                          # bias double buffer
                + 2 * tm * blk * x_bytes)              # output double buffer
    # Actual allocation + headroom, capped at physical VMEM (never below est).
    vmem_limit = int(max(16 << 20,
                         min(vmem_cap - (2 << 20), vmem_est + (8 << 20))))

    kernel = functools.partial(_sae_kernel, num_layers=config.num_layers)

    out = pl.pallas_call(
        kernel,
        out_shape=jax.ShapeDtypeStruct((config.n_out_blocks, b_pad, blk), x.dtype),
        grid_spec=pltpu.PrefetchScalarGridSpec(
            num_scalar_prefetch=6,
            grid=grid,
            in_specs=[
                # x: resident for the whole batch tile (DMA'd once per m tile).
                pl.BlockSpec((tm, din0_pad), lambda m, s, *_: (m, 0)),
                # Weight tiles are stored in grid-step order -> index by s.
                pl.BlockSpec((1, blk, blk), lambda m, s, *_: (s, 0, 0)),
                # Bias tile of this step's (layer, n) block.
                pl.BlockSpec((1, 1, blk),
                             lambda m, s, lay, kb, nb, lk, bb, ob: (bb[s], 0, 0)),
            ],
            out_specs=pl.BlockSpec(
                (1, tm, blk),
                lambda m, s, lay, kb, nb, lk, bb, ob: (ob[s], m, 0)),
            scratch_shapes=[
                pltpu.VMEM((2 * config.n_blk_max, tm, blk), jnp.float32)],
        ),
        compiler_params=pltpu.CompilerParams(
            dimension_semantics=("parallel", "arbitrary"),
            vmem_limit_bytes=vmem_limit,
        ),
    )(buffers["lay"], buffers["kb"], buffers["nb"], buffers["last_k"],
      buffers["bias_blk"], buffers["out_blk"],
      x_pad, buffers["w_blocks"], buffers["b_blocks"])

    out = out.transpose(1, 0, 2).reshape(b_pad, config.n_out_blocks * blk)
    return out[:batch, :config.out_features]


def init_sae_params(key, input_size, layers_architecture, dtype=jnp.float32):
    """Same layer stack as SAE.__init__, weights stored directly in (in, out)
    layout (pre-transposed once).  Init mimics nn.Linear default
    U(-1/sqrt(fan_in), 1/sqrt(fan_in))."""
    dims = [input_size] + list(layers_architecture) + [input_size]
    params = []
    for li in range(len(dims) - 1):
        in_f, out_f = dims[li], dims[li + 1]
        key, kw, kb = jax.random.split(key, 3)
        bound = 1.0 / (in_f ** 0.5)
        w = jax.random.uniform(kw, (in_f, out_f), dtype, -bound, bound)
        b = jax.random.uniform(kb, (out_f,), dtype, -bound, bound)
        params.append((w, b))
    return params


def pack_sae_params(params, param_dtype=jnp.bfloat16):
    """One-time ragged packing.  Each layer is zero-padded only to its own
    round_up(in, blk) x round_up(out, blk) and split into (blk, blk) tiles
    stored flat in the exact grid-step order the kernel consumes them, plus
    per-step int32 metadata (scalar-prefetched to SMEM).

    param_dtype defaults to bf16: the kernel is HBM-bound on the weight stream
    and keeps an f32 accumulator, so halving weight bytes is ~2x wall-clock on
    v5e/v6e.  Biases stay f32 (tiny)."""
    num_layers = len(params)
    layer_dims = [(int(w.shape[0]), int(w.shape[1])) for w, _ in params]
    w_bytes = jnp.dtype(param_dtype).itemsize
    blk = _choose_block(layer_dims, w_bytes)

    kin = [_cdiv(din, blk) for din, _ in layer_dims]
    kout = [_cdiv(dout, blk) for _, dout in layer_dims]
    bias_base = [0]
    for c in kout:
        bias_base.append(bias_base[-1] + c)

    w_blocks, b_blocks = [], []
    lay_l, kb_l, nb_l, lastk_l, bblk_l, oblk_l = [], [], [], [], [], []
    for l, (w, b) in enumerate(params):
        din, dout = layer_dims[l]
        wp = np.zeros((kin[l] * blk, kout[l] * blk), np.float32)
        wp[:din, :dout] = np.asarray(w, np.float32)
        bp = np.zeros((kout[l] * blk,), np.float32)
        bp[:dout] = np.asarray(b, np.float32)
        for nb in range(kout[l]):
            b_blocks.append(bp[nb * blk:(nb + 1) * blk][None, :])
            for kb in range(kin[l]):
                w_blocks.append(wp[kb * blk:(kb + 1) * blk,
                                   nb * blk:(nb + 1) * blk])
                lay_l.append(l)
                kb_l.append(kb)
                nb_l.append(nb)
                lastk_l.append(1 if kb == kin[l] - 1 else 0)
                bblk_l.append(bias_base[l] + nb)
                # Output block index only matters on the last layer; 0 elsewhere
                # keeps the resident output block constant until it is written.
                oblk_l.append(nb if l == num_layers - 1 else 0)

    buffers = dict(
        w_blocks=jnp.asarray(np.stack(w_blocks), dtype=param_dtype),
        b_blocks=jnp.asarray(np.stack(b_blocks), dtype=jnp.float32),
        lay=jnp.asarray(lay_l, jnp.int32),
        kb=jnp.asarray(kb_l, jnp.int32),
        nb=jnp.asarray(nb_l, jnp.int32),
        last_k=jnp.asarray(lastk_l, jnp.int32),
        bias_blk=jnp.asarray(bblk_l, jnp.int32),
        out_blk=jnp.asarray(oblk_l, jnp.int32),
    )
    config = SAEConfig(
        block=blk,
        num_layers=num_layers,
        num_steps=len(w_blocks),
        n_in_blocks=kin[0],
        n_out_blocks=kout[-1],
        n_blk_max=max(kin + kout),
        in_features=layer_dims[0][0],
        out_features=layer_dims[-1][1],
    )
    return buffers, config


def sae_forward_ref(x, params):
    """Pure-JAX reference (weights already in (in, out) layout)."""
    n_layers = len(params)
    for li, (w, b) in enumerate(params):
        x = x @ w + b
        if li < n_layers - 1:
            x = jax.nn.sigmoid(x)
    return x


if __name__ == "__main__":
    # Small synthetic config consistent with SAE(inputSize, layersArchitecture)
    input_size = 16
    layers_architecture = [32, 8]
    batch = 4

    key = jax.random.PRNGKey(0)
    key, kx = jax.random.split(key)
    x = jax.random.normal(kx, (batch, input_size), jnp.float32)
    params = init_sae_params(key, input_size, layers_architecture)

    ref = jax.block_until_ready(sae_forward_ref(x, params))

    fwd = jax.jit(sae_forward, static_argnames=("config",))

    # Default packing: bf16 weights (halves the HBM weight stream the kernel is
    # bound on); f32 accumulation inside the kernel -> loose tolerance vs f32 ref.
    buf_bf16, cfg_bf16 = pack_sae_params(params)
    out_bf16 = jax.block_until_ready(fwd(x, buf_bf16, cfg_bf16))
    assert out_bf16.shape == (batch, input_size)
    assert jnp.allclose(out_bf16, ref, atol=5e-2, rtol=5e-2), float(
        jnp.max(jnp.abs(out_bf16 - ref)))

    # Exactness check with f32 weight packing.
    buf_f32, cfg_f32 = pack_sae_params(params, param_dtype=jnp.float32)
    out_f32 = jax.block_until_ready(fwd(x, buf_f32, cfg_f32))
    assert jnp.allclose(out_f32, ref, atol=1e-5, rtol=1e-5), float(
        jnp.max(jnp.abs(out_f32 - ref)))

    print("KERNEL_OK")
</pallas_src>

<mosaic_0001>
module attributes {stable_mosaic.version = 11 : i64} {
  func.func @_sae_kernel(%arg0: i32, %arg1: i32, %arg2: memref<3xi32, #tpu.memory_space<smem>>, %arg3: memref<3xi32, #tpu.memory_space<smem>>, %arg4: memref<3xi32, #tpu.memory_space<smem>>, %arg5: memref<3xi32, #tpu.memory_space<smem>>, %arg6: memref<3xi32, #tpu.memory_space<smem>>, %arg7: memref<3xi32, #tpu.memory_space<smem>>, %arg8: memref<8x128xf32, #tpu.memory_space<vmem>>, %arg9: memref<1x128x128xbf16, #tpu.memory_space<vmem>>, %arg10: memref<1x1x128xf32, #tpu.memory_space<vmem>>, %arg11: memref<1x8x128xf32, #tpu.memory_space<vmem>>, %arg12: memref<2x8x128xf32, #tpu.memory_space<vmem>>) attributes {dimension_semantics = [#tpu.dimension_semantics<parallel>, #tpu.dimension_semantics<arbitrary>], iteration_bounds = array<i64: 1, 3>, scalar_prefetch = 6 : i64, scratch_operands = 1 : i64, tpu.core_type = #tpu.core_type<tc>, window_params = [{transform_indices = @transform_0, window_bounds = array<i64: 8, 128>}, {transform_indices = @transform_1, window_bounds = array<i64: 1, 128, 128>}, {transform_indices = @transform_2, window_bounds = array<i64: 1, 1, 128>}, {transform_indices = @transform_3, window_bounds = array<i64: 1, 8, 128>}]} {
    %0 = arith.index_cast %arg1 : i32 to index
    %1 = memref.load %arg2[%0] : memref<3xi32, #tpu.memory_space<smem>>
    %2 = arith.index_cast %arg1 : i32 to index
    %3 = memref.load %arg3[%2] : memref<3xi32, #tpu.memory_space<smem>>
    %4 = arith.index_cast %arg1 : i32 to index
    %5 = memref.load %arg4[%4] : memref<3xi32, #tpu.memory_space<smem>>
    %c0_i32 = arith.constant 0 : i32
    %6 = arith.cmpi eq, %3, %c0_i32 : i32
    %7 = arith.index_cast %arg1 : i32 to index
    %8 = memref.load %arg5[%7] : memref<3xi32, #tpu.memory_space<smem>>
    %c1_i32 = arith.constant 1 : i32
    %9 = arith.cmpi eq, %8, %c1_i32 : i32
    %c2_i32 = arith.constant 2 : i32
    %c0_i32_0 = arith.constant 0 : i32
    %10 = arith.cmpi eq, %c2_i32, %c0_i32_0 : i32
    %c1_i32_1 = arith.constant 1 : i32
    %11 = arith.select %10, %c1_i32_1, %c2_i32 : i32
    %12 = arith.remsi %1, %11 : i32
    %c0_i32_2 = arith.constant 0 : i32
    %13 = arith.cmpi ne, %12, %c0_i32_2 : i32
    %c0_i32_3 = arith.constant 0 : i32
    %14 = arith.cmpi slt, %12, %c0_i32_3 : i32
    %c0_i32_4 = arith.constant 0 : i32
    %15 = arith.cmpi slt, %11, %c0_i32_4 : i32
    %16 = arith.xori %14, %15 : i1
    %17 = arith.andi %16, %13 : i1
    %18 = arith.addi %12, %11 : i32
    %19 = arith.select %17, %18, %12 : i32
    %c1_i32_5 = arith.constant 1 : i32
    %20 = arith.subi %c1_i32_5, %19 : i32
    %c1_i32_6 = arith.constant 1 : i32
    %21 = arith.muli %19, %c1_i32_6 : i32
    %22 = arith.addi %21, %3 : i32
    %c1_i32_7 = arith.constant 1 : i32
    %23 = arith.muli %20, %c1_i32_7 : i32
    %24 = arith.addi %23, %5 : i32
    %c0_i32_8 = arith.constant 0 : i32
    %25 = arith.cmpi eq, %arg1, %c0_i32_8 : i32
    %26 = arith.extui %25 : i1 to i32
    %c0_i32_9 = arith.constant 0 : i32
    %27 = arith.cmpi ne, %26, %c0_i32_9 : i32
    scf.if %27 {
      %c0_18 = arith.constant 0 : index
      %c0_19 = arith.constant 0 : index
      %45 = vector.load %arg8[%c0_18, %c0_19] : memref<8x128xf32, #tpu.memory_space<vmem>>, vector<8x128xf32>
      %c0_20 = arith.constant 0 : index
      %c0_21 = arith.constant 0 : index
      %c0_22 = arith.constant 0 : index
      %46 = vector.load %arg12[%c0_20, %c0_21, %c0_22] : memref<2x8x128xf32, #tpu.memory_space<vmem>>, vector<1x8x128xf32>
      %47 = vector.shape_cast %46 : vector<1x8x128xf32> to vector<8x128xf32>
      %48 = vector.shape_cast %45 : vector<8x128xf32> to vector<1x8x128xf32>
      tpu.vector_store %arg12[%c0_20, %c0_21, %c0_22], %48 {strides = array<i32>} : memref<2x8x128xf32, #tpu.memory_space<vmem>>, vector<1x8x128xf32>,
    } else {
    }
    %28 = arith.index_cast %22 : i32 to index
    %c0 = arith.constant 0 : index
    %c0_10 = arith.constant 0 : index
    %29 = vector.load %arg12[%28, %c0, %c0_10] : memref<2x8x128xf32, #tpu.memory_space<vmem>>, vector<1x8x128xf32>
    %30 = vector.shape_cast %29 : vector<1x8x128xf32> to vector<8x128xf32>
    %c0_11 = arith.constant 0 : index
    %c0_12 = arith.constant 0 : index
    %c0_13 = arith.constant 0 : index
    %31 = vector.load %arg9[%c0_11, %c0_12, %c0_13] : memref<1x128x128xbf16, #tpu.memory_space<vmem>>, vector<1x128x128xbf16>
    %32 = vector.shape_cast %31 : vector<1x128x128xbf16> to vector<128x128xbf16>
    %33 = arith.truncf %30 : vector<8x128xf32> to vector<8x128xbf16>
    %cst = arith.constant dense<0.000000e+00> : vector<8x128xf32>
    %34 = tpu.matmul %33, %32, %cst {dimension_numbers = #tpu.dot_dimension_numbers<[1], [0], [0], [1], [0, 0, 1, 1], [], []>} : vector<8x128xbf16>, vector<128x128xbf16>, vector<8x128xf32> -> vector<8x128xf32>
    %true = arith.constant true
    %35 = arith.xori %9, %true : i1
    %36 = arith.andi %35, %6 : i1
    %37 = arith.extui %36 : i1 to i32
    %c0_i32_14 = arith.constant 0 : i32
    %38 = arith.cmpi ne, %37, %c0_i32_14 : i32
    scf.if %38 {
      %45 = arith.index_cast %24 : i32 to index
      %c0_18 = arith.constant 0 : index
      %c0_19 = arith.constant 0 : index
      %46 = vector.load %arg12[%45, %c0_18, %c0_19] : memref<2x8x128xf32, #tpu.memory_space<vmem>>, vector<1x8x128xf32>
      %47 = vector.shape_cast %46 : vector<1x8x128xf32> to vector<8x128xf32>
      %48 = vector.shape_cast %34 : vector<8x128xf32> to vector<1x8x128xf32>
      tpu.vector_store %arg12[%45, %c0_18, %c0_19], %48 {strides = array<i32>} : memref<2x8x128xf32, #tpu.memory_space<vmem>>, vector<1x8x128xf32>,
    } else {
    }
    %true_15 = arith.constant true
    %39 = arith.xori %6, %true_15 : i1
    %40 = arith.andi %35, %39 : i1
    %41 = arith.extui %40 : i1 to i32
    %c0_i32_16 = arith.constant 0 : i32
    %42 = arith.cmpi ne, %41, %c0_i32_16 : i32
    scf.if %42 {
      %45 = arith.index_cast %24 : i32 to index
      %c0_18 = arith.constant 0 : index
      %c0_19 = arith.constant 0 : index
      %46 = vector.load %arg12[%45, %c0_18, %c0_19] : memref<2x8x128xf32, #tpu.memory_space<vmem>>, vector<1x8x128xf32>
      %47 = vector.shape_cast %46 : vector<1x8x128xf32> to vector<8x128xf32>
      %48 = arith.addf %47, %34 : vector<8x128xf32>
      %49 = arith.index_cast %24 : i32 to index
      %c0_20 = arith.constant 0 : index
      %c0_21 = arith.constant 0 : index
      %50 = vector.load %arg12[%49, %c0_20, %c0_21] : memref<2x8x128xf32, #tpu.memory_space<vmem>>, vector<1x8x128xf32>
      %51 = vector.shape_cast %50 : vector<1x8x128xf32> to vector<8x128xf32>
      %52 = vector.shape_cast %48 : vector<8x128xf32> to vector<1x8x128xf32>
      tpu.vector_store %arg12[%49, %c0_20, %c0_21], %52 {strides = array<i32>} : memref<2x8x128xf32, #tpu.memory_space<vmem>>, vector<1x8x128xf32>,
    } else {
    }
    %43 = arith.extui %9 : i1 to i32
    %c0_i32_17 = arith.constant 0 : i32
    %44 = arith.cmpi ne, %43, %c0_i32_17 : i32
    scf.if %44 {
      %45 = arith.index_cast %24 : i32 to index
      %c0_18 = arith.constant 0 : index
      %c0_19 = arith.constant 0 : index
      %46 = vector.load %arg12[%45, %c0_18, %c0_19] : memref<2x8x128xf32, #tpu.memory_space<vmem>>, vector<1x8x128xf32>
      %47 = vector.shape_cast %46 : vector<1x8x128xf32> to vector<8x128xf32>
      %48 = arith.addf %47, %34 : vector<8x128xf32>
      %49 = arith.select %6, %34, %48 : vector<8x128xf32>
      %c0_20 = arith.constant 0 : index
      %c0_21 = arith.constant 0 : index
      %c0_22 = arith.constant 0 : index
      %50 = vector.load %arg10[%c0_20, %c0_21, %c0_22] : memref<1x1x128xf32, #tpu.memory_space<vmem>>, vector<1x1x128xf32>
      %51 = vector.shape_cast %50 : vector<1x1x128xf32> to vector<1x128xf32>
      %52 = vector.broadcast %51 : vector<1x128xf32> to vector<8x128xf32>
      %53 = arith.addf %49, %52 : vector<8x128xf32>
      %c2_i32_23 = arith.constant 2 : i32
      %54 = arith.cmpi eq, %1, %c2_i32_23 : i32
      %true_24 = arith.constant true
      %55 = arith.xori %54, %true_24 : i1
      %56 = arith.extui %55 : i1 to i32
      %c0_i32_25 = arith.constant 0 : i32
      %57 = arith.cmpi ne, %56, %c0_i32_25 : i32
      scf.if %57 {
        %60 = arith.negf %53 : vector<8x128xf32>
        %61 = math.exp %60 : vector<8x128xf32>
        %cst_27 = arith.constant 1.000000e+00 : f32
        %62 = vector.broadcast %cst_27 : f32 to vector<8x128xf32>
        %63 = arith.addf %62, %61 : vector<8x128xf32>
        %64 = arith.divf %62, %63 : vector<8x128xf32>
        %65 = arith.index_cast %24 : i32 to index
        %c0_28 = arith.constant 0 : index
        %c0_29 = arith.constant 0 : index
        %66 = vector.load %arg12[%65, %c0_28, %c0_29] : memref<2x8x128xf32, #tpu.memory_space<vmem>>, vector<1x8x128xf32>
        %67 = vector.shape_cast %66 : vector<1x8x128xf32> to vector<8x128xf32>
        %68 = vector.shape_cast %64 : vector<8x128xf32> to vector<1x8x128xf32>
        tpu.vector_store %arg12[%65, %c0_28, %c0_29], %68 {strides = array<i32>} : memref<2x8x128xf32, #tpu.memory_space<vmem>>, vector<1x8x128xf32>,
      } else {
      }
      %58 = arith.extui %54 : i1 to i32
      %c0_i32_26 = arith.constant 0 : i32
      %59 = arith.cmpi ne, %58, %c0_i32_26 : i32
      scf.if %59 {
        %c0_27 = arith.constant 0 : index
        %c0_28 = arith.constant 0 : index
        %c0_29 = arith.constant 0 : index
        %60 = vector.load %arg11[%c0_27, %c0_28, %c0_29] : memref<1x8x128xf32, #tpu.memory_space<vmem>>, vector<1x8x128xf32>
        %61 = vector.shape_cast %60 : vector<1x8x128xf32> to vector<8x128xf32>
        %62 = vector.shape_cast %53 : vector<8x128xf32> to vector<1x8x128xf32>
        tpu.vector_store %arg11[%c0_27, %c0_28, %c0_29], %62 {strides = array<i32>} : memref<1x8x128xf32, #tpu.memory_space<vmem>>, vector<1x8x128xf32>,
      } else {
      }
    } else {
    }
    return
  }
  func.func @transform_0(%arg0: i32, %arg1: i32, %arg2: memref<3xi32, #tpu.memory_space<smem>>, %arg3: memref<3xi32, #tpu.memory_space<smem>>, %arg4: memref<3xi32, #tpu.memory_space<smem>>, %arg5: memref<3xi32, #tpu.memory_space<smem>>, %arg6: memref<3xi32, #tpu.memory_space<smem>>, %arg7: memref<3xi32, #tpu.memory_space<smem>>) -> (i32, i32) {
    %c0_i32 = arith.constant 0 : i32
    %c0_i32_0 = arith.constant 0 : i32
    return %arg0, %c0_i32 : i32, i32
  }
  func.func @transform_1(%arg0: i32, %arg1: i32, %arg2: memref<3xi32, #tpu.memory_space<smem>>, %arg3: memref<3xi32, #tpu.memory_space<smem>>, %arg4: memref<3xi32, #tpu.memory_space<smem>>, %arg5: memref<3xi32, #tpu.memory_space<smem>>, %arg6: memref<3xi32, #tpu.memory_space<smem>>, %arg7: memref<3xi32, #tpu.memory_space<smem>>) -> (i32, i32, i32) {
    %c0_i32 = arith.constant 0 : i32
    %c0_i32_0 = arith.constant 0 : i32
    %c0_i32_1 = arith.constant 0 : i32
    return %arg1, %c0_i32, %c0_i32_0 : i32, i32, i32
  }
  func.func @transform_2(%arg0: i32, %arg1: i32, %arg2: memref<3xi32, #tpu.memory_space<smem>>, %arg3: memref<3xi32, #tpu.memory_space<smem>>, %arg4: memref<3xi32, #tpu.memory_space<smem>>, %arg5: memref<3xi32, #tpu.memory_space<smem>>, %arg6: memref<3xi32, #tpu.memory_space<smem>>, %arg7: memref<3xi32, #tpu.memory_space<smem>>) -> (i32, i32, i32) {
    %0 = arith.index_cast %arg1 : i32 to index
    %1 = memref.load %arg6[%0] : memref<3xi32, #tpu.memory_space<smem>>
    %c0_i32 = arith.constant 0 : i32
    %c0_i32_0 = arith.constant 0 : i32
    %c0_i32_1 = arith.constant 0 : i32
    return %1, %c0_i32, %c0_i32_0 : i32, i32, i32
  }
  func.func @transform_3(%arg0: i32, %arg1: i32, %arg2: memref<3xi32, #tpu.memory_space<smem>>, %arg3: memref<3xi32, #tpu.memory_space<smem>>, %arg4: memref<3xi32, #tpu.memory_space<smem>>, %arg5: memref<3xi32, #tpu.memory_space<smem>>, %arg6: memref<3xi32, #tpu.memory_space<smem>>, %arg7: memref<3xi32, #tpu.memory_space<smem>>) -> (i32, i32, i32) {
    %0 = arith.index_cast %arg1 : i32 to index
    %1 = memref.load %arg7[%0] : memref<3xi32, #tpu.memory_space<smem>>
    %c0_i32 = arith.constant 0 : i32
    %c0_i32_0 = arith.constant 0 : i32
    return %1, %arg0, %c0_i32 : i32, i32, i32
  }
}

</mosaic_0001>

<bundles_post_ra>
// kernel: sae_forward.1
= control target key start
LH: loop header
LB: loop body
LE: loop exit
PB: predicated region body
PF: predicated region fallthrough
CT: control target
= control target key end

     0   :  { %s1131_s0 = inlined_call_operand.vmem [shape: s32[3], index: 0, kind: input, shape index: {}]   ;;  %s1132_s6 = inlined_call_operand.vmem [shape: f32[8,128], index: 6, kind: input, shape index: {}]   ;;  %s1133_s7 = inlined_call_operand.hbm [shape: bf16[3,128,128], index: 7, kind: input, shape index: {}]   ;;  %s1134_s8 = inlined_call_operand.vmem [shape: f32[3,1,128], index: 8, kind: input, shape index: {}]   ;;  %s1135_s9 = inlined_call_operand.vmem [shape: f32[1,8,128], index: 9, kind: output, shape index: {}]   ;;  %s1136_s1 = inlined_call_operand.vmem [shape: s32[3], index: 1, kind: input, shape index: {}]   ;;  %s1137_s2 = inlined_call_operand.vmem [shape: s32[3], index: 2, kind: input, shape index: {}]   ;;  %s1138_s3 = inlined_call_operand.vmem [shape: s32[3], index: 3, kind: input, shape index: {}]   ;;  %s1139_s4 = inlined_call_operand.vmem [shape: s32[3], index: 4, kind: input, shape index: {}]   ;;  %s1140_s5 = inlined_call_operand.vmem [shape: s32[3], index: 5, kind: input, shape index: {}]  }
   0x1   :  { %s14_s11 = sshll.u32 %s1131_s0, 4  ;;  %s18_s14 = sshll.u32 %s1136_s1, 4  ;;  %s15_s11 = int_to_ptr.vmem [resolvable:$true] %s14_s11  ;;  %s19_s14 = int_to_ptr.vmem [resolvable:$true] %s18_s14 }
   0x2   :  { %s736_s15 = scalar_lea.vmem %s15_s11, 16  ;;  %p741_p1 = scmp.lt.s32.totalorder %s15_s11, %s15_s11 }
   0x3   :  { %p737_p0 = scmp.ne.s32.totalorder %s15_s11, %s736_s15  ;;  %p742_p2 = scmp.lt.s32.totalorder %s736_s15, %s736_s15 }
   0x5   :  { %p743_p3 = por %p742_p2, %p741_p1 }
   0x7   :  { %p744_p4 = pnand %p743_p3, %p737_p0 }
   0x9   :  { %747 = shalt.err (!%p744_p4)  }
   0xa   :  { %s890_s16 = smov [#allocation4]   ;;  %s748_s17 = scalar_lea.vmem %s19_s14, 16 }
   0xb   :  { %17 = dma.vmem_to_smem %s15_s11, 16, %s890_s16, [#allocation3] }
   0xc   :  { %p749_p5 = scmp.ne.s32.totalorder %s19_s14, %s748_s17  ;;  %p753_p6 = scmp.lt.s32.totalorder %s19_s14, %s19_s14 }
   0xd   :  { %p754_p7 = scmp.lt.s32.totalorder %s748_s17, %s748_s17 }
   0xf   :  { %p755_p8 = por %p754_p7, %p753_p6 }
  0x11   :  { %p756_p9 = pnand %p755_p8, %p749_p5 }
  0x13   :  { %759 = shalt.err (!%p756_p9)  }
  0x14   :  { %s891_s0 = smov [#allocation5]   ;;  %s22_s19 = sshll.u32 %s1137_s2, 4  ;;  %s23_s19 = int_to_ptr.vmem [resolvable:$true] %s22_s19 }
  0x15   :  { %21 = dma.vmem_to_smem %s19_s14, 16, %s891_s0, [#allocation3] }
  0x16   :  { %s26_s22 = sshll.u32 %s1138_s3, 4  ;;  %s760_s23 = scalar_lea.vmem %s23_s19, 16  ;;  %s27_s22 = int_to_ptr.vmem [resolvable:$true] %s26_s22 }
  0x17   :  { %p761_p10 = scmp.ne.s32.totalorder %s23_s19, %s760_s23  ;;  %p765_p11 = scmp.lt.s32.totalorder %s23_s19, %s23_s19 }
  0x18   :  { %p766_p12 = scmp.lt.s32.totalorder %s760_s23, %s760_s23 }
  0x1a   :  { %p767_p13 = por %p766_p12, %p765_p11 }
  0x1c   :  { %p768_p0 = pnand %p767_p13, %p761_p10 }
  0x1e   :  { %771 = shalt.err (!%p768_p0)  }
  0x1f   :  { %s892_s24 = smov [#allocation6]   ;;  %s772_s25 = scalar_lea.vmem %s27_s22, 16 }
  0x20   :  { %25 = dma.vmem_to_smem %s23_s19, 16, %s892_s24, [#allocation3] }
  0x21   :  { %p773_p1 = scmp.ne.s32.totalorder %s27_s22, %s772_s25  ;;  %p777_p2 = scmp.lt.s32.totalorder %s27_s22, %s27_s22 }
  0x22   :  { %p778_p3 = scmp.lt.s32.totalorder %s772_s25, %s772_s25 }
  0x24   :  { %p779_p4 = por %p778_p3, %p777_p2 }
  0x26   :  { %p780_p5 = pnand %p779_p4, %p773_p1 }
  0x28   :  { %783 = shalt.err (!%p780_p5)  }
  0x29   :  { %s893_s2 = smov [#allocation7]   ;;  %s30_s27 = sshll.u32 %s1139_s4, 4  ;;  %s31_s27 = int_to_ptr.vmem [resolvable:$true] %s30_s27 }
  0x2a   :  { %29 = dma.vmem_to_smem %s27_s22, 16, %s893_s2, [#allocation3] }
  0x2b   :  { %s34_s30 = sshll.u32 %s1140_s5, 4  ;;  %s784_s10 = scalar_lea.vmem %s31_s27, 16  ;;  %s35_s30 = int_to_ptr.vmem [resolvable:$true] %s34_s30 }
  0x2c   :  { %p785_p6 = scmp.ne.s32.totalorder %s31_s27, %s784_s10  ;;  %p789_p7 = scmp.lt.s32.totalorder %s31_s27, %s31_s27 }
  0x2d   :  { %p790_p8 = scmp.lt.s32.totalorder %s784_s10, %s784_s10 }
  0x2f   :  { %p791_p9 = por %p790_p8, %p789_p7 }
  0x31   :  { %p792_p10 = pnand %p791_p9, %p785_p6 }
  0x33   :  { %795 = shalt.err (!%p792_p10)  }
  0x34   :  { %s894_s11 = smov [#allocation8]   ;;  %s796_s12 = scalar_lea.vmem %s35_s30, 16 }
  0x35   :  { %33 = dma.vmem_to_smem %s31_s27, 16, %s894_s11, [#allocation3] }
  0x36   :  { %p797_p11 = scmp.ne.s32.totalorder %s35_s30, %s796_s12  ;;  %p801_p12 = scmp.lt.s32.totalorder %s35_s30, %s35_s30 }
  0x37   :  { %p802_p13 = scmp.lt.s32.totalorder %s796_s12, %s796_s12 }
  0x39   :  { %p803_p0 = por %p802_p13, %p801_p12 }
  0x3b   :  { %p804_p1 = pnand %p803_p0, %p797_p11 }
  0x3d   :  { %807 = shalt.err (!%p804_p1)  }
  0x3e   :  { %s895_s4 = smov [#allocation9]  }
  0x3f   :  { %37 = dma.vmem_to_smem %s35_s30, 16, %s895_s4, [#allocation3] }
  0x40   :  { %860 = dma.done.wait [#allocation3], 96 }
  0x41   :  { %861 = vsyncadd [#allocation3], 4294967200 }
  0x42   :  { %39 = sfence }
  0x43   :  { %40 = vsyncpa [#allocation11], 0 }
  0x44   :  { %42 = vsyncpa [#allocation11 + $0x1], 0  ;;  %s969_s5 = smov 0   ;;  %s971_s13 = smov 0  }
  0x45   :  { %s973_s14 = smov 0   ;;  %s975_s15 = smov 0  }
  0x46   :  { %s977_s16 = smov 0   ;;  %s979_s17 = smov 0  }
  0x47 LB: > { %s595_s0 = sadd.s32 4294967295, %s888_s17   ;;  %s57_s1 = sadd.s32 1, %s884_s16  ;;  %s888_s17 = sphi %s979_s17, %s48_s17   ;;  %s884_s16 = sphi %s977_s16, %s1148_s16   ;;  %s880_s15 = sphi %s975_s15, %s1147_s15   ;;  %s876_s14 = sphi %s973_s14, %s1146_s14   ;;  %s872_s13 = sphi %s971_s13, %s1145_s13   ;;  %s868_s5 = sphi %s969_s5, %s1144_s5  }
  0x48   : > { %p58_p2 = scmp.ge.s32.totalorder %s57_s1, 3  ;;  %s93_s18 = sadd.s32 1, %s876_s14 }
  0x49   : > { %p100_p3 = scmp.ne.s32.totalorder %s876_s14, %s872_s13  ;;  %p101_p4 = scmp.eq.s32.totalorder %s888_s17, 0 }
  0x4a   : > { %s1150_s1 = smov (%p58_p2, %s57_s1), 0  ;;  %p106_p6 = scmp.ne.s32.totalorder %s872_s13, %s868_s5 }
  0x4b   : > { %p1005_p5 = por %p101_p4, %p100_p3  ;;  %s90_s20 = ssub.s32 %s884_s16, %s1150_s1 }
  0x4c   : > { %p107_p7 = scmp.eq.s32.totalorder %s595_s0, 0  ;;  %p91_p8 = scmp.eq.s32.totalorder %s90_s20, 0 }
  0x4d   : > { %p665_p10 = scmp.lt.s32.totalorder %s888_s17, 3  ;;  %s195_s23 = sand.u32 1, %s876_s14  }
  0x4e   : > { %p1012_p9 = por %p107_p7, %p106_p6  ;;  %s629_s24 = sshll.u32 %s884_s16, 10 }
  0x4f   : > { %s1018_s22 = scalar_select %p91_p8, %s876_s14, %s93_s18  }
  0x50   : > { %s600_s25 = sshll.u32 %s195_s23, 6  ;;  %s205_s26 = scalar_lea.hbm %s1133_s7, %s629_s24 }
  0x51   : > { %s199_s27 = scalar_lea.vmem [#allocation10], %s600_s25  ;;  %p1027_p11 = pnand %p665_p10, %p1005_p5 }
  0x52   : > { %s206_s28 = sshll.u32 %s199_s27, 4  ;;  %s196_s30 = scalar_lea.sflag [#allocation11], %s195_s23  ;;  %s207_s28 = int_to_ptr.vmem [resolvable:$true] %s206_s28 }
  0x53   : > { %p810_p12 = pneg %p1027_p11  ;;  %s821_s10 = scalar_lea.vmem %s207_s28, 1024 }
  0x54   : > { %p822_p13 = scmp.ne.s32.totalorder %s207_s28, %s821_s10  ;;  %s896_s11 = smov [#allocation10]  }
  0x55   : > { %s826_s12 = sshll.u32 %s896_s11, 4  ;;  %s827_s12 = int_to_ptr.vmem [resolvable:$false] %s826_s12 }
  0x56   : > { %p824_p0 = pnand %p822_p13, %p810_p12  ;;  %s828_s4 = scalar_lea.vmem %s827_s12, 2048 }
  0x57   : > { %p829_p2 = scmp.lt.s32.totalorder %s207_s28, %s827_s12  ;;  %p830_p3 = scmp.lt.s32.totalorder %s828_s4, %s821_s10 }
  0x58   : > { %p825_p1 = pneg %p824_p0 }
  0x59   : > { %p831_p4 = por %p830_p3, %p829_p2 }
  0x5b   : > { %p832_p5 = pnand %p831_p4, %p825_p1 }
  0x5d   : > { %835 = shalt.err (!%p832_p5)
}
  0x5e   : > { %s897_s5 = smov 64   ;;  %s898_s0 = smov 4  }
  0x5f   : > { %664 = dma.hbm_to_vmem [thread:$0]  (!%p1027_p11), %s205_s26, 1024, %s207_s28, %s196_s30, %s897_s5, %s897_s5, %s898_s0  }
  0x60   : > { %p603_p6 = scmp.ge.s32.totalorder %s888_s17, 1  ;;  %p222_p7 = scmp.lt.s32.totalorder %s888_s17, 4 }
  0x62   : > { %p223_p8 = pnand %p603_p6, %p222_p7 }
  0x63   : > { %s228_s18 = sand.u32 (!%p223_p8), 1, %s872_s13  }
  0x64   : > { %226 = sbr.rel (%p223_p8) target bundleno = 429 (0x1ad), region = 32  ;;  %s604_s19 = sshll.u32 (!%p223_p8), %s228_s18, 6 }
  0x65   : > { %s229_s20 = scalar_lea.sflag (!%p223_p8), [#allocation11], %s228_s18  ;;  %s1038_s23 = scalar_lea.vmem (!%p223_p8), [#allocation10], %s604_s19 }
  0x69   : > { %863 = dma.done.wait (%p1012_p9), %s229_s20, 1024  }
  0x6a   : > { %865 = vsyncadd (%p1012_p9), %s229_s20, 4294966272  ;;  %s270_s24 = sld [smem:[#allocation8 + %s880_s15]]  ;;  %p609_p0 = scmp.ne.s32.totalorder %s880_s15, 0 }
  0x6b   : > { %s275_s25 = sld [smem:[#allocation9 + %s880_s15]] }
  0x6c   : > { %s1047_s2 = sld [smem:[#allocation5 + %s880_s15]] }
  0x6d   : > { %s1050_s3 = sld [smem:[#allocation4 + %s880_s15]] }
  0x6e   : > { %s1053_s26 = sld [smem:[#allocation7 + %s880_s15]] }
  0x6f   : > { %s287_s0 = sld [smem:[#allocation6 + %s880_s15]] }
  0x70   : > { %p271_p10 = scmp.lt.s32.totalorder %s270_s24, 2 }
  0x71   : > { %p276_p9 = scmp.lt.s32.totalorder %s275_s25, 0 }
  0x72   : > { %s1152_s24 = smov (!%p271_p10, %s270_s24), 2  ;;  %p288_p11 = scmp.eq.s32.totalorder %s1047_s2, 0 }
  0x73   : > { %s1154_s25 = smov (!%p276_p9, %s275_s25), 0  ;;  %s273_s28 = scalar_lea.vmem %s1134_s8, %s1152_s24 }
  0x74   : > { %s605_s29 = sshll.u32 %s1154_s25, 3  ;;  %p291_p12 = scmp.lt.s32.totalorder %s1050_s3, 0 }
  0x75   : > { %s1066_s11 = scalar_lea.vmem %s1135_s9, %s605_s29  ;;  %s292_s12 = ssub.s32 0, %s1050_s3 }
  0x76   : > { %s606_s4 = smin.u32 %s292_s12, %s1050_s3 }
  0x77   : > { %s294_s5 = sand.u32 1, %s606_s4  }
  0x78   : > { %s295_s18 = ssub.s32 0, %s294_s5 }
  0x79   : > { %s1156_s18 = smov (!%p291_p12, %s295_s18), %s294_s5 }
  0x7a   : > { %p608_p13 = scmp.lt.s32.totalorder %s1156_s18, 0  ;;  %s301_s19 = sadd.s32 2, %s1156_s18 }
  0x7b   : > { %309 = sbr.rel (%p609_p0) target bundleno = 130 (0x82), region = 40 }
  0x7c   : > { %s1158_s19 = smov (!%p608_p13, %s301_s19), %s1156_s18 }
  0x7d   : > { %s303_s20 = ssub.s32 1, %s1158_s19  ;;  %s304_s25 = sadd.s32 %s1158_s19, %s1047_s2 }
  0x7e   : > { %s1076_s21 = sadd.s32 %s303_s20, %s287_s0 }
  0x80   : > { %v310_v0 = vld [vmem:[%s1132_s6] sm:$0xff] }
  0x81   : > { %311 = vst [vmem:[#allocation2] sm:$0xff] %v310_v0 }
  0x82 PF: > { %v724_v1 = vld [vmem:[%s1038_s23 + $0x38] sm:$0xff]   ;;  %v899_v2 = vmov 0.0   ;;  %v725_v3 = vld [vmem:[%s1038_s23 + $0x30] sm:$0xff]   ;;  %vm900_vm0 = vmmov 0   ;;  %v726_v4 = vld [vmem:[%s1038_s23 + $0x28] sm:$0xff]   ;;  %s610_s15 = sshll.u32 %s304_s25, 3 }
  0x83   : > { %639 = vmatprep.subr.bf16.mxu0 %v899_v2  ;;  %655 = vmatprep.mubr.msk.bf16.mxu0 %vm900_vm0, %v899_v2  ;;  %v727_v5 = vld [vmem:[%s1038_s23 + $0x20] sm:$0xff]   ;;  %v728_v6 = vld [vmem:[%s1038_s23 + $0x18] sm:$0xff]   ;;  %v729_v7 = vld [vmem:[%s1038_s23 + $0x10] sm:$0xff]   ;;  %s313_s30 = scalar_lea.vmem [#allocation2], %s610_s15  ;;  %p420_p1 = scmp.ne.s32.totalorder %s1053_s26, 1 }
  0x84   : > { %640 = vmatpush3.bf16.msra.mxu0 %v724_v1  ;;  %v730_v8 = vld [vmem:[%s1038_s23 + $0x8] sm:$0xff]   ;;  %v731_v9 = vld [vmem:[%s1038_s23] sm:$0xff]  }
  0x85   : > { %641 = vmatprep.subr.bf16.mxu0 %v899_v2  ;;  %p421_p2 = pnand %p420_p1, %p288_p11 }
  0x86   : > { %s619_s10 = sshll.u32 (!%p421_p2), %s1076_s21, 3 }
  0x87   : > { %s426_s12 = scalar_lea.vmem (!%p421_p2), [#allocation2], %s619_s10 }
  0x88   : > { %642 = vmatpush3.bf16.msra.mxu0 %v725_v3  ;;  %v314_v10 = vld [vmem:[%s313_s30] sm:$0xff] }
  0x89   : > { %643 = vmatprep.subr.bf16.mxu0 %v899_v2  ;;  %v331_v11 = vpack.c.bf16 %v314_v10, %v314_v10 }
  0x8c   : > { %644 = vmatpush3.bf16.msra.mxu0 %v726_v4 }
  0x8d   : > { %645 = vmatprep.subr.bf16.mxu0 %v899_v2 }
  0x90   : > { %646 = vmatpush3.bf16.msra.mxu0 %v727_v5 }
  0x91   : > { %647 = vmatprep.subr.bf16.mxu0 %v899_v2 }
  0x94   : > { %648 = vmatpush3.bf16.msra.mxu0 %v728_v6 }
  0x95   : > { %649 = vmatprep.subr.bf16.mxu0 %v899_v2 }
  0x98   : > { %650 = vmatpush3.bf16.msra.mxu0 %v729_v7 }
  0x99   : > { %651 = vmatprep.subr.bf16.mxu0 %v899_v2 }
  0x9c   : > { %652 = vmatpush3.bf16.msra.mxu0 %v730_v8 }
  0x9d   : > { %653 = vmatprep.subr.bf16.mxu0 %v899_v2 }
  0xa0   : > { %654 = vmatpush3.bf16.msra.mxu0 %v731_v9 }
  0xa3   : > { %656 = vmatmul.mubr.bf16.vlgmr.msra.gmra.mxu0 %v331_v11 }
 0x163   : > { %v414_v12 = vpop.f32.mrf.mxu0 }
 0x165   : > { %v657_v13 = vpop.f32.mrf.mxu0  ;;  %424 = sbr.rel (%p421_p2) target bundleno = 363 (0x16b), region = 44 }
 0x167   : > { %v417_v14 = vpop.f32.mrf.mxu0 }
 0x169   : > { %v658_v15 = vpop.f32.mrf.mxu0 }
 0x16a   : > { %427 = vst [vmem:[%s426_s12] sm:$0xff] %v414_v12 }
 0x16b PF: > { %p428_p3 = scmp.ne.s32.totalorder %s1047_s2, 0 }
 0x16d   : > { %p429_p4 = pnand %p428_p3, %p420_p1 }
 0x16e   : > { %s620_s23 = sshll.u32 (!%p429_p4), %s1076_s21, 3 }
 0x16f   : > { %432 = sbr.rel (%p429_p4) target bundleno = 376 (0x178), region = 48  ;;  %s434_s4 = scalar_lea.vmem (!%p429_p4), [#allocation2], %s620_s23 }
 0x174   : > { %v435_v16 = vld [vmem:[%s434_s4] sm:$0xff] }
 0x175   : > { %v436_v17 = vadd.f32 %v435_v16, %v414_v12 }
 0x177   : > { %437 = vst [vmem:[%s434_s4] sm:$0xff] %v436_v17 }
 0x178 PF: > { %440 = sbr.rel (%p420_p1) target bundleno = 429 (0x1ad), region = 52  ;;  %s622_s5 = sshll.u32 (!%p420_p1), %s1076_s21, 3 }
 0x179   : > { %s442_s0 = scalar_lea.vmem (!%p420_p1), [#allocation2], %s622_s5  ;;  %p624_p5 = scmp.eq.s32.totalorder (!%p420_p1), %s1050_s3, 2 }
 0x17d   : > { %s445_s18 = scalar_select %p288_p11, 1, 0  ;;  %v623_v21 = vld [vmem:[%s273_s28] ss:$0 sm:$0xff] }
 0x17e   : > { %v443_v18 = vld [vmem:[%s442_s0] sm:$0xff]  ;;  %461 = sbr.rel (%p624_p5) target bundleno = 421 (0x1a5), region = 56 }
 0x17f   : > { %v444_v19 = vadd.f32 %v443_v18, %v414_v12  ;;  %v446_v20 = vstv %s445_s18 }
 0x180   : > { %vm447_vm1 = vcmp.eq.s32.totalorder %v446_v20, 1 }
 0x181   : > { %v448_v22 = vsel %vm447_vm1, %v414_v12, %v444_v19 }
 0x182   : > { %v456_v23 = vadd.f32 %v623_v21, %v448_v22 }
 0x184   : > { %v625_v24 = vmul.f32 -1.442695, %v456_v23 }
 0x186   : > { %732 = vpow2.f32 %v625_v24 }
 0x193   : > { %v733_v25 = vpop.eup %732 }
 0x194   : > { %v465_v26 = vadd.f32 1.0, %v733_v25 }
 0x196   : > { %734 = vrcp.f32 %v465_v26 }
 0x1a3   : > { %v735_v27 = vpop.eup %734 }
 0x1a4   : > { %468 = vst [vmem:[%s442_s0] sm:$0xff] %v735_v27 }
 0x1a5 PF: > { %p626_p6 = scmp.ne.s32.totalorder %s1050_s3, 2 }
 0x1a7   : > { %471 = sbr.rel (%p626_p6) target bundleno = 429 (0x1ad), region = 60 }
 0x1ac   : > { %472 = vst [vmem:[%s1066_s11] sm:$0xff] %v456_v23 }
 0x1ad PF: > { %s48_s17 = sadd.s32 1, %s888_s17   ;;  %s1144_s5 = smov %s872_s13 }
 0x1ae   : > { %p45_p7 = scmp.ge.s32.totalorder %s48_s17, 5   ;;  %s1145_s13 = smov %s876_s14 }
 0x1af   : > { %s1146_s14 = smov %s1018_s22  ;;  %s1147_s15 = smov %s884_s16 }
 0x1b0   : > { %s1148_s16 = smov %s1150_s1  ;;  %47 = sbr.rel (!%p45_p7) target bundleno = 71 (0x47), region = 106 }
 0x1b5   :  { %501 = vsyncpa [#allocation11], 1 }
 0x1b6   :  { %503 = vsyncpa [#allocation11 + $0x1], 1 }

</bundles_post_ra>
